<compile_context>
chip_gen: v5e
topology: v5e:2x2
jax: 0.10.0
libtpu: 0.0.40
codegen_flags: <defaults>
</compile_context>

<pallas_src>
import math

import jax
import jax.numpy as jnp
from jax.experimental import pallas as pl
from jax.experimental.pallas import tpu as pltpu


def _round_up(x, m):
    return ((x + m - 1) // m) * m


def _tpu_vmem_capacity_bytes():
    """Best-effort per-core VMEM capacity; conservative (v7x, 64 MiB) fallback."""
    try:
        return int(pltpu.get_tpu_info().vmem_capacity_bytes)
    except Exception:
        return 64 * 1024 * 1024


def _choose_tiling(Lq, Lk_pad, Dk, Dv, attn_itemsize, tq):
    """Generation-aware query-tile size and scoped VMEM limit."""
    vmem_cap = _tpu_vmem_capacity_bytes()
    # Leave headroom for compiler-internal scratch: ~70% of physical, <=96 MiB.
    vmem_limit = min(96 * 1024 * 1024, (vmem_cap * 7) // 10)

    if tq is None:
        # Bigger tiles on 128 MiB parts (fewer per-step overheads, denser
        # stores); 256 on the 64 MiB v7x.
        tq = 512 if vmem_cap >= 96 * 1024 * 1024 else 256
    tq = max(8, min(_round_up(tq, 8), _round_up(Lq, 8)))

    def est(t):
        kv = 2 * Lk_pad * (Dk + Dv) * 2        # K, V bf16, double-buffered
        qb = 2 * t * Dk * 2                    # Q bf16 tiles
        mk = 2 * t * Lk_pad                    # mask int8 tiles
        ob = 2 * t * Dv * 4                    # out f32 tiles
        ab = 2 * t * Lk_pad * attn_itemsize    # attn tiles
        tmp = 3 * t * Lk_pad * 4               # f32 scores / exp temporaries
        return kv + qb + mk + ob + ab + tmp

    # Shrink the query tile until the estimate fits comfortably in the budget.
    while tq > 8 and est(tq) > (vmem_limit * 8) // 10:
        tq = max(8, _round_up(tq // 2, 8))
    return tq, vmem_limit


def _attention_kernel(q_ref, k_ref, v_ref, mask_ref, out_ref, attn_ref):
    # q_ref: (TQ, d_k) bf16, k_ref: (Lk, d_k) bf16, v_ref: (Lk, d_v) bf16,
    # mask_ref: (TQ, Lk) int8 (nonzero == masked out).
    d_k = q_ref.shape[-1]
    scale = 1.0 / math.sqrt(d_k)

    # Q K^T on the MXU: bf16 operands straight from VMEM, f32 accumulation.
    # Contract the last dims so K is consumed in its natural [Lk, d_k] layout
    # (no XLU transpose).
    scores = jax.lax.dot_general(
        q_ref[...], k_ref[...],
        dimension_numbers=(((1,), (1,)), ((), ())),
        preferred_element_type=jnp.float32,
    )
    scores = scores * jnp.float32(scale)  # exact f32 scale; VPU filler
    # masked_fill_(attn_mask, -1e9)
    scores = jnp.where(mask_ref[...] != 0, jnp.float32(-1.0e9), scores)

    # Numerically stable softmax along the key axis (f32, exact reciprocal).
    m = jnp.max(scores, axis=-1, keepdims=True)
    e = jnp.exp(scores - m)
    denom = jnp.sum(e, axis=-1, keepdims=True)
    attn = e * pl.reciprocal(denom, approx=False)

    # Emit attn once (bf16 by default) and reuse the *same* rounded values for
    # the PV matmul so `out` and the returned `attn` are consistent.
    p = attn.astype(attn_ref.dtype)
    attn_ref[...] = p
    out_ref[...] = jnp.dot(
        p, v_ref[...], preferred_element_type=jnp.float32
    ).astype(out_ref.dtype)


def self_attention(Q, K, V, attn_mask, *, tq=None, attn_dtype=jnp.bfloat16):
    """Pallas scaled-dot-product attention.

    Q: [B, H, Lq, Dk], K: [B, H, Lk, Dk], V: [B, H, Lk, Dv],
    attn_mask: [B, H, Lq, Lk] (bool or int; nonzero == masked).
    Returns (output [B,H,Lq,Dv] float32, attn [B,H,Lq,Lk] `attn_dtype`).
    """
    B, H, Lq, Dk = Q.shape
    Lk = K.shape[2]
    Dv = V.shape[3]
    BH = B * H

    # Wrapper-side bf16 cast: halves K/V HBM->VMEM traffic and VMEM residency,
    # and avoids re-casting the same per-head K/V block once per query tile.
    q = Q.reshape(BH, Lq, Dk).astype(jnp.bfloat16)
    k = K.reshape(BH, Lk, Dk).astype(jnp.bfloat16)
    v = V.reshape(BH, Lk, Dv).astype(jnp.bfloat16)
    # int8 mask: 1 byte/elem for the [BH, Lq, Lk] stream.
    mask = attn_mask.reshape(BH, Lq, Lk).astype(jnp.int8)
    # TODO(synk): if the mask is structural (causal / key lengths), build it
    # in-kernel from scalar-prefetched lengths instead of shipping it from HBM.

    # Lane-dense key axis: pad Lk to a multiple of 128 (only when it matters)
    # so the (TQ, Lk) attn stores lower to full-lane vst instead of vst.msk.
    # Padded keys are marked masked so they receive ~0 attention weight.
    Lk_pad = Lk
    if Lk >= 128 and Lk % 128 != 0:
        Lk_pad = _round_up(Lk, 128)
        k = jnp.pad(k, ((0, 0), (0, Lk_pad - Lk), (0, 0)))
        v = jnp.pad(v, ((0, 0), (0, Lk_pad - Lk), (0, 0)))
        mask = jnp.pad(mask, ((0, 0), (0, 0), (0, Lk_pad - Lk)), constant_values=1)

    attn_itemsize = jnp.dtype(attn_dtype).itemsize
    tq, vmem_limit = _choose_tiling(Lq, Lk_pad, Dk, Dv, attn_itemsize, tq)

    Lq_pad = _round_up(Lq, tq)
    nq = Lq_pad // tq
    if Lq_pad != Lq:
        # Padded query rows are computed (fully unmasked -> no NaNs) and
        # sliced off below.
        q = jnp.pad(q, ((0, 0), (0, Lq_pad - Lq), (0, 0)))
        mask = jnp.pad(mask, ((0, 0), (0, Lq_pad - Lq), (0, 0)))

    # Advisory cost model for the XLA scheduler around the custom call.
    bytes_accessed = (
        BH * Lq_pad * Dk * 2            # Q (bf16)
        + BH * Lk_pad * Dk * 2          # K (bf16)
        + BH * Lk_pad * Dv * 2          # V (bf16)
        + BH * Lq_pad * Lk_pad          # mask (int8)
        + BH * Lq_pad * Dv * 4          # out (f32)
        + BH * Lq_pad * Lk_pad * attn_itemsize  # attn
    )
    cost = pl.CostEstimate(
        flops=2 * BH * Lq_pad * Lk_pad * (Dk + Dv),
        transcendentals=BH * Lq_pad * Lk_pad,
        bytes_accessed=bytes_accessed,
    )

    # TODO(synk): for very long contexts (Lk >~ 4-8k) add a key-tile grid axis
    # with online softmax (flash-style) so resident VMEM is independent of Lk
    # on v7x's 64 MiB part; the current design keeps full-Lk K/V/mask planes.
    out, attn = pl.pallas_call(
        _attention_kernel,
        out_shape=(
            jax.ShapeDtypeStruct((BH, Lq_pad, Dv), jnp.float32),
            jax.ShapeDtypeStruct((BH, Lq_pad, Lk_pad), attn_dtype),
        ),
        grid=(BH, nq),
        in_specs=[
            pl.BlockSpec((None, tq, Dk), lambda b, i: (b, i, 0)),       # Q tile
            pl.BlockSpec((None, Lk_pad, Dk), lambda b, i: (b, 0, 0)),   # K (per head)
            pl.BlockSpec((None, Lk_pad, Dv), lambda b, i: (b, 0, 0)),   # V (per head)
            pl.BlockSpec((None, tq, Lk_pad), lambda b, i: (b, i, 0)),   # mask tile
        ],
        out_specs=(
            pl.BlockSpec((None, tq, Dv), lambda b, i: (b, i, 0)),       # output tile
            pl.BlockSpec((None, tq, Lk_pad), lambda b, i: (b, i, 0)),   # attn tile
        ),
        compiler_params=pltpu.CompilerParams(
            dimension_semantics=("parallel", "parallel"),
            vmem_limit_bytes=int(vmem_limit),
        ),
        cost_estimate=cost,
    )(q, k, v, mask)

    if Lq_pad != Lq:
        out = out[:, :Lq, :]
        attn = attn[:, :Lq, :]
    if Lk_pad != Lk:
        attn = attn[:, :, :Lk]
    return out.reshape(B, H, Lq, Dv), attn.reshape(B, H, Lq, Lk)


def _reference(Q, K, V, attn_mask):
    d_k = K.shape[-1]
    scores = jnp.einsum("bhqd,bhkd->bhqk", Q, K) / jnp.sqrt(jnp.float32(d_k))
    scores = jnp.where(attn_mask, -1.0e9, scores)
    attn = jax.nn.softmax(scores, axis=-1)
    out = jnp.einsum("bhqk,bhkd->bhqd", attn, V)
    return out, attn


def _check(B, H, Lq, Lk, Dk, Dv, key, p=0.25):
    kq, kk, kv, km = jax.random.split(key, 4)
    Q = jax.random.normal(kq, (B, H, Lq, Dk), dtype=jnp.float32)
    K = jax.random.normal(kk, (B, H, Lk, Dk), dtype=jnp.float32)
    V = jax.random.normal(kv, (B, H, Lk, Dv), dtype=jnp.float32)
    attn_mask = jax.random.bernoulli(km, p=p, shape=(B, H, Lq, Lk))

    out, attn = self_attention(Q, K, V, attn_mask)
    jax.block_until_ready((out, attn))

    ref_out, ref_attn = _reference(Q, K, V, attn_mask)
    # bf16 MXU operands + bf16 attn output => looser tolerance vs f32 ref.
    assert jnp.allclose(attn.astype(jnp.float32), ref_attn, atol=5e-2, rtol=5e-2), (
        "attn mismatch"
    )
    assert jnp.allclose(out, ref_out, atol=5e-2, rtol=5e-2), "output mismatch"


if __name__ == "__main__":
    key = jax.random.PRNGKey(0)
    k1, k2 = jax.random.split(key)
    # small shapes consistent with the module's forward signature
    _check(B=2, H=2, Lq=8, Lk=8, Dk=32, Dv=32, key=k1)
    # exercises the Lq-padding path (Lq not a multiple of the query tile)
    _check(B=1, H=2, Lq=12, Lk=8, Dk=32, Dv=32, key=k2)
    print("KERNEL_OK")
</pallas_src>

<mosaic_0001>
module attributes {stable_mosaic.version = 11 : i64} {
  func.func @_attention_kernel(%arg0: i32, %arg1: i32, %arg2: memref<1x8x32xbf16, #tpu.memory_space<vmem>>, %arg3: memref<1x8x32xbf16, #tpu.memory_space<vmem>>, %arg4: memref<1x8x32xbf16, #tpu.memory_space<vmem>>, %arg5: memref<1x8x8xi8, #tpu.memory_space<vmem>>, %arg6: memref<1x8x32xf32, #tpu.memory_space<vmem>>, %arg7: memref<1x8x8xbf16, #tpu.memory_space<vmem>>) attributes {dimension_semantics = [#tpu.dimension_semantics<parallel>, #tpu.dimension_semantics<parallel>], iteration_bounds = array<i64: 4, 1>, scalar_prefetch = 0 : i64, scratch_operands = 0 : i64, tpu.core_type = #tpu.core_type<tc>, window_params = [{transform_indices = @transform_0, window_bounds = array<i64: 1, 8, 32>}, {transform_indices = @transform_1, window_bounds = array<i64: 1, 8, 32>}, {transform_indices = @transform_2, window_bounds = array<i64: 1, 8, 32>}, {transform_indices = @transform_3, window_bounds = array<i64: 1, 8, 8>}, {transform_indices = @transform_4, window_bounds = array<i64: 1, 8, 32>}, {transform_indices = @transform_5, window_bounds = array<i64: 1, 8, 8>}]} {
    %c0 = arith.constant 0 : index
    %c0_0 = arith.constant 0 : index
    %c0_1 = arith.constant 0 : index
    %0 = vector.load %arg2[%c0, %c0_0, %c0_1] : memref<1x8x32xbf16, #tpu.memory_space<vmem>>, vector<1x8x32xbf16>
    %1 = vector.shape_cast %0 : vector<1x8x32xbf16> to vector<8x32xbf16>
    %c0_2 = arith.constant 0 : index
    %c0_3 = arith.constant 0 : index
    %c0_4 = arith.constant 0 : index
    %2 = vector.load %arg3[%c0_2, %c0_3, %c0_4] : memref<1x8x32xbf16, #tpu.memory_space<vmem>>, vector<1x8x32xbf16>
    %3 = vector.shape_cast %2 : vector<1x8x32xbf16> to vector<8x32xbf16>
    %cst = arith.constant dense<0.000000e+00> : vector<8x8xf32>
    %4 = tpu.matmul %1, %3, %cst {dimension_numbers = #tpu.dot_dimension_numbers<[1], [1], [0], [0], [0, 0, 1, 0], [], []>} : vector<8x32xbf16>, vector<8x32xbf16>, vector<8x8xf32> -> vector<8x8xf32>
    %cst_5 = arith.constant 0.176776692 : f32
    %5 = vector.broadcast %cst_5 : f32 to vector<8x8xf32>
    %6 = arith.mulf %4, %5 : vector<8x8xf32>
    %c0_6 = arith.constant 0 : index
    %c0_7 = arith.constant 0 : index
    %c0_8 = arith.constant 0 : index
    %7 = vector.load %arg5[%c0_6, %c0_7, %c0_8] : memref<1x8x8xi8, #tpu.memory_space<vmem>>, vector<1x8x8xi8>
    %8 = vector.shape_cast %7 : vector<1x8x8xi8> to vector<8x8xi8>
    %c0_i8 = arith.constant 0 : i8
    %9 = vector.broadcast %c0_i8 : i8 to vector<8x8xi8>
    %10 = arith.cmpi ne, %8, %9 : vector<8x8xi8>
    %cst_9 = arith.constant -1.000000e+09 : f32
    %11 = vector.broadcast %cst_9 : f32 to vector<8x8xf32>
    %12 = arith.select %10, %11, %6 : vector<8x8xi1>, vector<8x8xf32>
    %cst_10 = arith.constant dense<0xFF800000> : vector<8xf32>
    %13 = vector.multi_reduction <maximumf>, %12, %cst_10 [1] : vector<8x8xf32> to vector<8xf32>
    %14 = vector.shape_cast %13 : vector<8xf32> to vector<8x1xf32>
    %15 = vector.broadcast %14 : vector<8x1xf32> to vector<8x8xf32>
    %16 = arith.subf %12, %15 : vector<8x8xf32>
    %17 = math.exp %16 : vector<8x8xf32>
    %cst_11 = arith.constant dense<0.000000e+00> : vector<8xf32>
    %18 = vector.multi_reduction <add>, %17, %cst_11 [1] : vector<8x8xf32> to vector<8xf32>
    %19 = vector.shape_cast %18 : vector<8xf32> to vector<8x1xf32>
    %20 = tpu.reciprocal %19 : vector<8x1xf32> -> vector<8x1xf32>
    %21 = vector.broadcast %20 : vector<8x1xf32> to vector<8x8xf32>
    %22 = arith.mulf %17, %21 : vector<8x8xf32>
    %23 = arith.truncf %22 : vector<8x8xf32> to vector<8x8xbf16>
    %c0_12 = arith.constant 0 : index
    %c0_13 = arith.constant 0 : index
    %c0_14 = arith.constant 0 : index
    %24 = vector.load %arg7[%c0_12, %c0_13, %c0_14] : memref<1x8x8xbf16, #tpu.memory_space<vmem>>, vector<1x8x8xbf16>
    %25 = vector.shape_cast %24 : vector<1x8x8xbf16> to vector<8x8xbf16>
    %26 = vector.shape_cast %23 : vector<8x8xbf16> to vector<1x8x8xbf16>
    tpu.vector_store %arg7[%c0_12, %c0_13, %c0_14], %26 {strides = array<i32>} : memref<1x8x8xbf16, #tpu.memory_space<vmem>>, vector<1x8x8xbf16>,
    %c0_15 = arith.constant 0 : index
    %c0_16 = arith.constant 0 : index
    %c0_17 = arith.constant 0 : index
    %27 = vector.load %arg4[%c0_15, %c0_16, %c0_17] : memref<1x8x32xbf16, #tpu.memory_space<vmem>>, vector<1x8x32xbf16>
    %28 = vector.shape_cast %27 : vector<1x8x32xbf16> to vector<8x32xbf16>
    %cst_18 = arith.constant dense<0.000000e+00> : vector<8x32xf32>
    %29 = tpu.matmul %23, %28, %cst_18 {dimension_numbers = #tpu.dot_dimension_numbers<[1], [0], [0], [1], [0, 0, 1, 1], [], []>} : vector<8x8xbf16>, vector<8x32xbf16>, vector<8x32xf32> -> vector<8x32xf32>
    %c0_19 = arith.constant 0 : index
    %c0_20 = arith.constant 0 : index
    %c0_21 = arith.constant 0 : index
    %30 = vector.load %arg6[%c0_19, %c0_20, %c0_21] : memref<1x8x32xf32, #tpu.memory_space<vmem>>, vector<1x8x32xf32>
    %31 = vector.shape_cast %30 : vector<1x8x32xf32> to vector<8x32xf32>
    %32 = vector.shape_cast %29 : vector<8x32xf32> to vector<1x8x32xf32>
    tpu.vector_store %arg6[%c0_19, %c0_20, %c0_21], %32 {strides = array<i32>} : memref<1x8x32xf32, #tpu.memory_space<vmem>>, vector<1x8x32xf32>,
    return
  }
  func.func @transform_0(%arg0: i32, %arg1: i32) -> (i32, i32, i32) {
    %c0_i32 = arith.constant 0 : i32
    %c0_i32_0 = arith.constant 0 : i32
    return %arg0, %arg1, %c0_i32 : i32, i32, i32
  }
  func.func @transform_1(%arg0: i32, %arg1: i32) -> (i32, i32, i32) {
    %c0_i32 = arith.constant 0 : i32
    %c0_i32_0 = arith.constant 0 : i32
    %c0_i32_1 = arith.constant 0 : i32
    return %arg0, %c0_i32, %c0_i32_0 : i32, i32, i32
  }
  func.func @transform_2(%arg0: i32, %arg1: i32) -> (i32, i32, i32) {
    %c0_i32 = arith.constant 0 : i32
    %c0_i32_0 = arith.constant 0 : i32
    %c0_i32_1 = arith.constant 0 : i32
    return %arg0, %c0_i32, %c0_i32_0 : i32, i32, i32
  }
  func.func @transform_3(%arg0: i32, %arg1: i32) -> (i32, i32, i32) {
    %c0_i32 = arith.constant 0 : i32
    %c0_i32_0 = arith.constant 0 : i32
    return %arg0, %arg1, %c0_i32 : i32, i32, i32
  }
  func.func @transform_4(%arg0: i32, %arg1: i32) -> (i32, i32, i32) {
    %c0_i32 = arith.constant 0 : i32
    %c0_i32_0 = arith.constant 0 : i32
    return %arg0, %arg1, %c0_i32 : i32, i32, i32
  }
  func.func @transform_5(%arg0: i32, %arg1: i32) -> (i32, i32, i32) {
    %c0_i32 = arith.constant 0 : i32
    %c0_i32_0 = arith.constant 0 : i32
    return %arg0, %arg1, %c0_i32 : i32, i32, i32
  }
}

</mosaic_0001>

<bundles_post_ra>
// kernel: tpu_custom_call.1
= control target key start
LH: loop header
LB: loop body
LE: loop exit
PB: predicated region body
PF: predicated region fallthrough
CT: control target
= control target key end

     0   :  { %s1276_s0 = inlined_call_operand.hbm [shape: bf16[4,8,32], index: 0, kind: input, shape index: {}]   ;;  %s1277_s1 = inlined_call_operand.hbm [shape: bf16[4,8,32], index: 1, kind: input, shape index: {}]   ;;  %s1278_s2 = inlined_call_operand.hbm [shape: bf16[4,8,32], index: 2, kind: input, shape index: {}]   ;;  %s1279_s3 = inlined_call_operand.hbm [shape: s8[4,8,8], index: 3, kind: input, shape index: {}]   ;;  %s1280_s4 = inlined_call_operand.hbm [shape: f32[4,8,32], index: 4, kind: output, shape index: {0}]   ;;  %s1281_s5 = inlined_call_operand.hbm [shape: bf16[4,8,8], index: 5, kind: output, shape index: {1}]  }
   0x1   :  { %1286 = sst [smem:[#allocation23_spill]] %s1276_s0 }
   0x2   :  { %1287 = sst [smem:[#allocation24_spill]] %s1277_s1 }
   0x3   :  { %11 = vsyncpa [#allocation3], 0 }
   0x4   :  { %13 = vsyncpa [#allocation3 + $0x1], 0 }
   0x5   :  { %14 = vsyncpa [#allocation6], 0 }
   0x6   :  { %16 = vsyncpa [#allocation6 + $0x1], 0 }
   0x7   :  { %17 = vsyncpa [#allocation9], 0 }
   0x8   :  { %19 = vsyncpa [#allocation9 + $0x1], 0 }
   0x9   :  { %20 = vsyncpa [#allocation4], 0 }
   0xa   :  { %22 = vsyncpa [#allocation4 + $0x1], 0 }
   0xb   :  { %23 = vsyncpa [#allocation12], 0 }
   0xc   :  { %25 = vsyncpa [#allocation12 + $0x1], 0  ;;  %s1078_s18 = smov 0   ;;  %s1080_s19 = smov 0  }
   0xd   :  { %s1082_s20 = smov 0   ;;  %s1084_s21 = smov 0  }
   0xe   :  { %s1086_s22 = smov 0   ;;  %s1088_s23 = smov 0  }
   0xf LB: > { %1288 = sst [smem:[#allocation18_spill]] %s1025_s18  ;;  %s1109_s24 = sadd.s32 4294967295, %s1045_s23   ;;  %s1045_s23 = sphi %s1088_s23, %s31_s23   ;;  %s1041_s22 = sphi %s1086_s22, %s1309_s22   ;;  %s1037_s21 = sphi %s1084_s21, %s1308_s21   ;;  %s1033_s20 = sphi %s1082_s20, %s1304_s20   ;;  %s1029_s19 = sphi %s1080_s19, %s1307_s19   ;;  %s1025_s18 = sphi %s1078_s18, %s1306_s18  }
  0x10   : > { %1289 = sst [smem:[#allocation19_spill]] %s1033_s20  ;;  %s690_s25 = sadd.s32 4294967294, %s1045_s23  }
  0x11   : > { %s43_s26 = sadd.s32 1, %s1041_s22  ;;  %s52_s27 = sadd.s32 1, %s1033_s20 }
  0x12   : > { %p45_p0 = scmp.ge.s32.totalorder %s43_s26, 4  ;;  %p59_p1 = scmp.ne.s32.totalorder %s1033_s20, %s1029_s19 }
  0x13   : > { %p60_p2 = scmp.eq.s32.totalorder %s1045_s23, 0  ;;  %p65_p3 = scmp.ne.s32.totalorder %s1029_s19, %s1025_s18 }
  0x14   : > { %s1311_s26 = smov (%p45_p0, %s43_s26), 0  ;;  %p66_p5 = scmp.eq.s32.totalorder %s1109_s24, 0 }
  0x15   : > { %1290 = sst [smem:[#allocation20_spill]] %s1311_s26  ;;  %p1121_p4 = por %p60_p2, %p59_p1 }
  0x16   : > { %s47_s29 = ssub.s32 %s1041_s22, %s1311_s26  ;;  %p171_p6 = scmp.eq.s32.totalorder %s1109_s24, 3 }
  0x17   : > { %p50_p7 = scmp.eq.s32.totalorder %s47_s29, 0  ;;  %p1129_p8 = por %p66_p5, %p65_p3 }
  0x18   : > { %p1133_p9 = por %p171_p6, %p59_p1  ;;  %p177_p10 = scmp.eq.s32.totalorder %s690_s25, 3 }
  0x19   : > { %s1138_s7 = scalar_select %p50_p7, %s1033_s20, %s52_s27  }
  0x1a   : > { %p1140_p11 = por %p177_p10, %p65_p3  ;;  %p748_p12 = scmp.lt.s32.totalorder %s1045_s23, 4 }
  0x1b   : > { %1294 = sst [smem:[#allocation21_spill]] %s1138_s7  ;;  %s1146_s9 = sand.u32 1, %s1033_s20  }
  0x1c   : > { %s1295_s8 = scalar_select %p1140_p11, 1, 0 }
  0x1d   : > { %s693_s10 = sshll.u32 %s1146_s9, 2  ;;  %s694_s11 = sshll.u32 %s1041_s22, 2 }
  0x1e   : > { %1296 = sst [smem:[#allocation22_spill]] %s1295_s8  ;;  %p1152_p13 = pnand %p748_p12, %p1121_p4 }
  0x1f   : > { %s245_s13 = sand.u32 1, %s1045_s23   ;;  %s1298_s1 = sld [smem:[#allocation24_spill]] }
  0x20   : > { %s249_s25 = scalar_lea.vmem [#allocation5], %s693_s10  ;;  %s246_s29 = scalar_lea.sflag [#allocation6], %s245_s13 }
  0x21   : > { %s257_s27 = sshll.u32 %s249_s25, 4  ;;  %p701_p0 = scmp.ge.s32.totalorder %s1045_s23, 1  ;;  %s258_s27 = int_to_ptr.vmem [resolvable:$true] %s257_s27 }
  0x22   : > { %p301_p1 = scmp.lt.s32.totalorder %s1045_s23, 5  ;;  %s1300_s0 = sld [smem:[#allocation23_spill]] }
  0x23   : > { %s229_s25 = scalar_lea.vmem [#allocation2], %s693_s10  ;;  %s226_s13 = scalar_lea.sflag [#allocation3], %s1146_s9 }
  0x24   : > { %p1164_p2 = pnand %p701_p0, %p301_p1  ;;  %s272_s7 = scalar_lea.hbm %s1278_s2, %s694_s11 }
  0x25   : > { %s253_s16 = scalar_lea.hbm %s1298_s1, %s694_s11  ;;  %s238_s1 = sshll.u32 %s229_s25, 4  ;;  %s239_s1 = int_to_ptr.vmem [resolvable:$true] %s238_s1 }
  0x26   : > { %s255_s17 = sshll.u32 %s253_s16, 4  ;;  %s274_s20 = sshll.u32 %s272_s7, 4  ;;  %s256_s17 = int_to_ptr.hbm [resolvable:$true] %s255_s17  ;;  %s275_s20 = int_to_ptr.hbm [resolvable:$true] %s274_s20 }
  0x27   : > { %734 = dma.hbm_to_vmem [thread:$0]  (!%p1152_p13), %s256_s17, 64, %s258_s27, %s246_s29  }
  0x28   : > { %s234_s15 = scalar_lea.hbm %s1300_s0, %s694_s11  ;;  %s268_s8 = scalar_lea.vmem [#allocation7], %s693_s10 }
  0x29   : > { %s236_s16 = sshll.u32 %s234_s15, 4  ;;  %s276_s26 = sshll.u32 %s268_s8, 4  ;;  %s237_s16 = int_to_ptr.hbm [resolvable:$true] %s236_s16  ;;  %s277_s26 = int_to_ptr.vmem [resolvable:$true] %s276_s26 }
  0x2a   : > { %731 = dma.hbm_to_vmem [thread:$0]  (!%p1152_p13), %s237_s16, 64, %s239_s1, %s226_s13  }
  0x2b   : > { %737 = dma.hbm_to_vmem [thread:$0]  (!%p1152_p13), %s275_s20, 64, %s277_s26, %s246_s29  }
  0x2c   : > { %s699_s14 = sshll.u32 %s1146_s9, 1  ;;  %s700_s15 = sshll.u32 %s1041_s22, 1 }
  0x2d   : > { %s292_s18 = scalar_lea.hbm %s1279_s3, %s700_s15  ;;  %s287_s1 = scalar_lea.vmem [#allocation8], %s699_s14 }
  0x2e   : > { %s296_s16 = sshll.u32 %s287_s1, 4  ;;  %s294_s13 = sshll.u32 %s292_s18, 4  ;;  %s297_s16 = int_to_ptr.vmem [resolvable:$true] %s296_s16  ;;  %s295_s13 = int_to_ptr.hbm [resolvable:$true] %s294_s13 }
  0x2f   : > { %s284_s11 = scalar_lea.sflag [#allocation9], %s1146_s9  ;;  %305 = sbr.rel (%p1164_p2) target bundleno = 597 (0x255), region = 36 }
  0x30   : > { %740 = dma.hbm_to_vmem [thread:$0]  (!%p1152_p13), %s295_s13, 32, %s297_s16, %s284_s11  }
  0x31   : > { %s1190_s20 = sand.u32 (!%p1164_p2), 1, %s1029_s19  }
  0x32   : > { %s1193_s7 = sshll.u32 (!%p1164_p2), %s1190_s20, 2  ;;  %s308_s0 = scalar_lea.sflag (!%p1164_p2), [#allocation3], %s1190_s20 }
  0x33   : > { %s311_s8 = scalar_lea.vmem (!%p1164_p2), [#allocation2], %s1193_s7 }
  0x34   : > { %1004 = dma.done.wait (%p1129_p8), %s308_s0, 64  }
  0x35   : > { %1006 = vsyncadd (%p1129_p8), %s308_s0, 4294967232  ;;  %s317_s18 = sand.u32 1, %s1109_s24   ;;  %s321_s10 = scalar_lea.vmem [#allocation5], %s1193_s7 }
  0x36   : > { %s318_s9 = scalar_lea.sflag [#allocation6], %s317_s18 }
  0x37   : > { %1008 = dma.done.wait (%p1129_p8), %s318_s9, 128  }
  0x38   : > { %1010 = vsyncadd (%p1129_p8), %s318_s9, 4294967168  ;;  %s705_s12 = sshll.u32 %s1190_s20, 1  ;;  %s331_s29 = scalar_lea.vmem [#allocation7], %s1193_s7 }
  0x39   : > { %s338_s28 = scalar_lea.sflag [#allocation9], %s1190_s20  ;;  %s341_s17 = scalar_lea.vmem [#allocation8], %s705_s12 }
  0x3a   : > { %1012 = dma.done.wait (%p1129_p8), %s338_s28, 32  }
  0x3b   : > { %1014 = vsyncadd (%p1129_p8), %s338_s28, 4294967264  ;;  %vm394_vm0 = vcmask 261120   ;;  %v393_v0 = vld [vmem:[%s321_s10] sm:$0xf]  ;;  %v392_v2 = vld [vmem:[%s311_s8] sm:$0xf] }
  0x3c   : > { %v399_v1 = vsel %vm394_vm0, %v393_v0, 0  ;;  %v415_v3 = vld [vmem:[%s341_s17] sm:$0x3]  ;;  %v1047_v4 = vmov 0   ;;  %vm421_vm3 = vcmask 64512   ;;  %vm453_vm4 = vcmask 1043456  }
  0x3d   : > { %408 = vmatpush.bf16.xpose.msra.mxu0 %v399_v1  ;;  %vm416_vm1 = vnez %v415_v3  ;;  %v449_v17 = vld [vmem:[%s331_s29] sm:$0xf]  ;;  %vm447_vm9 = vcmask 60416   ;;  %s388_s24 = scalar_lea.vmem [#allocation11], %s1193_s7  ;;  %s713_s30 = sshll.u32 %s1037_s21, 2 }
  0x3e   : > { %v417_v5 = vsel %vm416_vm1, 16843009, %v1047_v4  ;;  %v455_v18 = vsel %vm453_vm4, %v449_v17, 0  ;;  %s503_s14 = scalar_lea.hbm %s1281_s5, %s713_s30  ;;  %s505_s15 = sshll.u32 %s388_s24, 4  ;;  %s506_s15 = int_to_ptr.vmem [resolvable:$true] %s505_s15 }
  0x3f   : > { %v418_v6 = vunpack.c.0.s8 %v417_v5  ;;  %464 = vmatpush.bf16.msra.mxu1 %v455_v18  ;;  %s507_s25 = sshll.u32 %s503_s14, 4  ;;  %s477_s1 = scalar_lea.sflag [#allocation12], %s1190_s20  ;;  %s508_s25 = int_to_ptr.hbm [resolvable:$true] %s507_s25 }
  0x40   : > { %s937_s16 = sshra.s32 %s508_s25, 4  ;;  %s943_s0 = scalar_lea.hbm %s1281_s5, 16  ;;  %s938_s16 = int_to_ptr.hbm [resolvable:$true] %s937_s16 }
  0x41   : > { %vm419_vm2 = vcmp.ne.s32.totalorder %v418_v6, 0  ;;  %s939_s13 = scalar_lea.hbm %s938_s16, 4  ;;  %p944_p6 = scmp.lt.s32.totalorder %s938_s16, %s1281_s5 }
  0x42   : > { %p940_p3 = scmp.ne.s32.totalorder %s938_s16, %s939_s13  ;;  %p945_p7 = scmp.lt.s32.totalorder %s943_s0, %s939_s13 }
  0x44   : > { %708 = vmatmul.msk.bf16.vlgmr.msra.gmra.mxu0 %vm394_vm0, %v392_v2  ;;  %p941_p4 = pnand %p940_p3, %p1133_p9  ;;  %p946_p8 = por %p945_p7, %p944_p6 }
  0x46   : > { %p942_p5 = pneg %p941_p4 }
  0x48   : > { %p947_p10 = pnand %p946_p8, %p942_p5 }
  0xc1   : > { %v410_v7 = vpop.f32.mrf.mxu0 }
  0xc2   : > { %v414_v8 = vmul.f32 0.17677669, %v410_v7 }
  0xc4   : > { %v420_v9 = vsel %vm419_vm2, -1e+09, %v414_v8 }
  0xc5   : > { %v422_v10 = vsel %vm421_vm3, %v420_v9, -inf }
  0xc6   : > { %423 = vmax.xlane.f32.xlu0 %v422_v10 }
  0xc9   : > { %v412_v11 = vpop.f32.mrf.mxu0 }
 0x139   : > { %v424_v12 = vpop.xlane.xlu0 %423 }
 0x13a   : > { %v425_v13 = vsub.f32 %v420_v9, %v424_v12 }
 0x13c   : > { %v426_v14 = vmul.f32 1.442695, %v425_v13 }
 0x13e   : > { %799 = vpow2.f32 %v426_v14 }
 0x144   : > { %v800_v15 = vpop.eup %799 }
 0x145   : > { %v428_v16 = vsel %vm421_vm3, %v800_v15, 0.0 }
 0x146   : > { %429 = vadd.xlane.f32.xlu0 %v428_v16 }
 0x1b9   : > { %v430_v19 = vpop.xlane.xlu0 %429 }
 0x1ba   : > { %801 = vrcp.f32 %v430_v19  ;;  %v442_v23 = vand.u32 2147483648, %v430_v19  ;;  %v440_v25 = vand.u32 2147483647, %v430_v19  ;;  %vm436_vm6 = vweird.f32 %v430_v19 }
 0x1bc   : > { %v443_v27 = vor.u32 1.1754944e-38, %v442_v23  ;;  %vm441_vm8 = vcmp.eq.f32.partialorder %v440_v25, 8.507059e+37 }
 0x1c0   : > { %v802_v20 = vpop.eup %801 }
 0x1c1   : > { %v432_v21 = vmul.f32 %v802_v20, %v430_v19  ;;  %vm437_vm5 = vweird.f32 %v802_v20 }
 0x1c2   : > { %vm438_vm7 = vmor %vm436_vm6, %vm437_vm5 }
 0x1c3   : > { %v433_v22 = vsub.f32 1.0, %v432_v21 }
 0x1c5   : > { %v434_v24 = vmul.f32 %v802_v20, %v433_v22 }
 0x1c7   : > { %v435_v26 = vadd.f32 %v802_v20, %v434_v24 }
 0x1c9   : > { %v439_v28 = vsel %vm438_vm7, %v802_v20, %v435_v26 }
 0x1ca   : > { %v444_v29 = vsel %vm441_vm8, %v443_v27, %v439_v28 }
 0x1cb   : > { %v445_v30 = vmul.f32 %v800_v15, %v444_v29 }
 0x1cd   : > { %v446_v31 = vpack.c.bf16 %v445_v30, %v445_v30 }
 0x1cf   : > { %709 = vmatmul.msk.bf16.vlgmr.msra.gmra.mxu1 %vm421_vm3, %v446_v31  ;;  %448 = vst.msk [vmem:[%s388_s24] sm:$0xf] %vm447_vm9, %v446_v31 }
 0x1d0   : > { %950 = shalt.err (!%p947_p10)
}
 0x1d1   : > { %725 = dma.vmem_to_hbm [thread:$0]  (%p1133_p9), %s506_s15, 64, %s508_s25, %s477_s1  }
 0x1d2   : > { %s712_s9 = sshll.u32 %s1037_s21, 3  ;;  %s706_s10 = sshll.u32 %s1190_s20, 3 }
 0x1d3   : > { %s488_s28 = scalar_lea.hbm %s1280_s4, %s712_s9  ;;  %s381_s17 = scalar_lea.vmem [#allocation10], %s706_s10 }
 0x1d4   : > { %s490_s24 = sshll.u32 %s381_s17, 4  ;;  %s492_s30 = sshll.u32 %s488_s28, 4  ;;  %s491_s24 = int_to_ptr.vmem [resolvable:$true] %s490_s24  ;;  %s493_s30 = int_to_ptr.hbm [resolvable:$true] %s492_s30 }
 0x1d5   : > { %s472_s27 = scalar_lea.sflag [#allocation4], %s1190_s20  ;;  %s965_s26 = sshra.s32 %s493_s30, 4  ;;  %s966_s26 = int_to_ptr.hbm [resolvable:$true] %s965_s26 }
 0x1d6   : > { %s967_s14 = scalar_lea.hbm %s966_s26, 8  ;;  %s971_s25 = scalar_lea.hbm %s1280_s4, 32 }
 0x1d7   : > { %p968_p12 = scmp.ne.s32.totalorder %s966_s26, %s967_s14  ;;  %p972_p1 = scmp.lt.s32.totalorder %s966_s26, %s1280_s4 }
 0x1d8   : > { %p973_p2 = scmp.lt.s32.totalorder %s971_s25, %s967_s14 }
 0x1d9   : > { %p969_p13 = pnand %p968_p12, %p1133_p9 }
 0x1da   : > { %p974_p3 = por %p973_p2, %p972_p1 }
 0x1db   : > { %p970_p0 = pneg %p969_p13 }
 0x1dd   : > { %p975_p4 = pnand %p974_p3, %p970_p0 }
 0x24c   : > { %v466_v32 = vpop.f32.mrf.mxu1 }
 0x24d   : > { %470 = vst.msk [vmem:[%s381_s17] sm:$0xff] %vm394_vm0, %v466_v32 }
 0x24e   : > { %978 = shalt.err (!%p975_p4)
}
 0x24f   : > { %724 = dma.vmem_to_hbm [thread:$0]  (%p1133_p9), %s491_s24, 128, %s493_s30, %s472_s27  }
 0x254   : > { %v468_v33 = vpop.f32.mrf.mxu1 }
 0x255 PF: > { %s1301_s20 = sld [smem:[#allocation18_spill]]  ;;  %p749_p5 = scmp.ge.s32.totalorder %s1045_s23, 2 }
 0x257   : > { %p742_p6 = pnand %p749_p5, %p1140_p11 }
 0x259   : > { %p743_p7 = pneg %p742_p6 }
 0x25b   : > { %s519_s11 = sand.u32 1, %s1301_s20  }
 0x25c   : > { %s520_s7 = scalar_lea.sflag [#allocation4], %s519_s11 }
 0x25d   : > { %1016 = dma.done.wait (%p743_p7), %s520_s7, 128  }
 0x25e   : > { %1018 = vsyncadd (%p743_p7), %s520_s7, 4294967168  ;;  %s530_s0 = scalar_lea.sflag [#allocation12], %s519_s11 }
 0x25f   : > { %1020 = dma.done.wait (%p743_p7), %s530_s0, 64  }
 0x260   : > { %1022 = vsyncadd (%p743_p7), %s530_s0, 4294967232  ;;  %s31_s23 = sadd.s32 1, %s1045_s23   ;;  %s1303_s6 = sld [smem:[#allocation19_spill]] }
 0x261   : > { %p28_p8 = scmp.ge.s32.totalorder %s31_s23, 6   ;;  %s1304_s20 = sld [smem:[#allocation21_spill]] }
 0x262   : > { %s1305_s8 = sld [smem:[#allocation20_spill]]  ;;  %s1306_s18 = smov %s1029_s19 }
 0x263   : > { %s1308_s21 = smov %s1041_s22 }
 0x264   :  { %30 = sbr.rel (!%p28_p8) target bundleno = 15 (0xf), region = 135 }
 0x266   : > { %s1307_s19 = smov %s1303_s6 }
 0x268   : > { %s1309_s22 = smov %s1305_s8 }
 0x269   :  { %536 = vsyncpa [#allocation3], 1 }
 0x26a   :  { %538 = vsyncpa [#allocation3 + $0x1], 1 }
 0x26b   :  { %539 = vsyncpa [#allocation6], 1 }
 0x26c   :  { %541 = vsyncpa [#allocation6 + $0x1], 1 }
 0x26d   :  { %542 = vsyncpa [#allocation9], 1 }
 0x26e   :  { %544 = vsyncpa [#allocation9 + $0x1], 1 }
 0x26f   :  { %545 = vsyncpa [#allocation4], 1 }
 0x270   :  { %547 = vsyncpa [#allocation4 + $0x1], 1 }
 0x271   :  { %548 = vsyncpa [#allocation12], 1 }
 0x272   :  { %550 = vsyncpa [#allocation12 + $0x1], 1 }

</bundles_post_ra>
